<compile_context>
chip_gen: v7x
topology: tpu7x:2x2x1
jax: 0.10.0
libtpu: 0.0.40
codegen_flags: <defaults>
</compile_context>

<pallas_src>
import jax
import jax.numpy as jnp
from jax.experimental import pallas as pl
from jax.experimental.pallas import tpu as pltpu

TB_MAX = 2048  # batch rows per grid step (multiple of 8; ~7-8 MB VMEM footprint)


def _qg_kernel(jet_ref, pf_ref, w1j_ref, w1p_ref, b1_ref, w2_ref, b2_ref, o_ref):
    # fc1 over the (virtually) concatenated input, split into its jet /
    # particle blocks; the embedding Linear is pre-folded into w1p / b1.
    h = jnp.dot(jet_ref[...], w1j_ref[...], preferred_element_type=jnp.float32)
    h = h + jnp.dot(pf_ref[...], w1p_ref[...], preferred_element_type=jnp.float32)
    h = h + b1_ref[...]
    h = jnp.maximum(h, 0.0)  # ReLU
    # fc2 (tiny N; cost negligible next to the fc1 matmuls)
    y = jnp.dot(h, w2_ref[...], preferred_element_type=jnp.float32)
    o_ref[...] = (y + b2_ref[...]).astype(o_ref.dtype)


def quark_gluon_forward(jet_features, particle_features, params):
    """jet_features: (B, J) f32, particle_features: (B, P, 3) f32."""
    B, J = jet_features.shape
    _, P, _ = particle_features.shape

    W_e, b_e = params["emb_w"], params["emb_b"]   # (E, 3), (E,)
    W1, b1 = params["fc1_w"], params["fc1_b"]     # (H, J + P*E), (H,)
    W2, b2 = params["fc2_w"], params["fc2_b"]     # (O, H), (O,)
    E = W_e.shape[0]
    H = W1.shape[0]
    O = W2.shape[0]

    # ---- Fold the embedding Linear into fc1's particle block (exact fusion) ----
    W1_jet = W1[:, :J]                                     # (H, J)
    W1_emb = W1[:, J:].reshape(H, P, E)                    # (H, P, E)
    W1_pf = jnp.einsum("hpe,ek->hpk", W1_emb, W_e).reshape(H, P * 3)
    b1_eff = b1 + jnp.einsum("hpe,e->h", W1_emb, b_e)

    # Kernel-side layouts: weights pre-transposed to (in, out), biases as rows.
    w1j_t = W1_jet.T                    # (J, H)
    w1p_t = W1_pf.T                     # (P*3, H)
    w2_t = W2.T                         # (H, O)
    b1_row = b1_eff.reshape(1, H)
    b2_row = b2.reshape(1, O)

    # Free reshape (row-major contiguous): (B, P, 3) -> (B, P*3).
    pf_flat = particle_features.reshape(B, P * 3)

    # ---- Batch tiling (pipelined over the grid; no input padding passes) ----
    if B <= TB_MAX:
        tb = B                       # block == full dim: always a legal block
    else:
        tb = TB_MAX                  # multiple of 8; last block masked by Pallas
    grid = (pl.cdiv(B, tb),)

    out = pl.pallas_call(
        _qg_kernel,
        out_shape=jax.ShapeDtypeStruct((B, O), jnp.float32),
        grid=grid,
        in_specs=[
            pl.BlockSpec((tb, J), lambda i: (i, 0)),        # jet tile
            pl.BlockSpec((tb, P * 3), lambda i: (i, 0)),    # particle tile
            pl.BlockSpec((J, H), lambda i: (0, 0)),         # W1 (jet block), resident
            pl.BlockSpec((P * 3, H), lambda i: (0, 0)),     # W1 (folded particle block)
            pl.BlockSpec((1, H), lambda i: (0, 0)),         # b1_eff
            pl.BlockSpec((H, O), lambda i: (0, 0)),         # W2
            pl.BlockSpec((1, O), lambda i: (0, 0)),         # b2
        ],
        out_specs=pl.BlockSpec((tb, O), lambda i: (i, 0)),
        compiler_params=pltpu.CompilerParams(
            dimension_semantics=("parallel",)),
    )(jet_features, pf_flat, w1j_t, w1p_t, b1_row, w2_t, b2_row)

    return out


def init_params(key, num_particles, embedding_dim, jet_input_dim, hidden_dim,
                output_dim):
    """PyTorch-default Linear init: uniform(+-1/sqrt(fan_in)) for W and b."""
    ks = jax.random.split(key, 6)
    d_fc1 = jet_input_dim + num_particles * embedding_dim

    def lin(kw, kb, out_d, in_d):
        bound = 1.0 / jnp.sqrt(jnp.float32(in_d))
        w = jax.random.uniform(kw, (out_d, in_d), jnp.float32, -bound, bound)
        b = jax.random.uniform(kb, (out_d,), jnp.float32, -bound, bound)
        return w, b

    emb_w, emb_b = lin(ks[0], ks[1], embedding_dim, 3)
    fc1_w, fc1_b = lin(ks[2], ks[3], hidden_dim, d_fc1)
    fc2_w, fc2_b = lin(ks[4], ks[5], output_dim, hidden_dim)
    return {"emb_w": emb_w, "emb_b": emb_b,
            "fc1_w": fc1_w, "fc1_b": fc1_b,
            "fc2_w": fc2_w, "fc2_b": fc2_b}


def _reference_forward(jet, pf, params):
    """Pure-JAX transcription of the PyTorch forward (unfused)."""
    emb = jnp.einsum("bpk,ek->bpe", pf, params["emb_w"]) + params["emb_b"]
    emb_flat = emb.reshape(jet.shape[0], -1)
    x = jnp.concatenate([jet, emb_flat], axis=1)
    h = jnp.maximum(x @ params["fc1_w"].T + params["fc1_b"], 0.0)
    return h @ params["fc2_w"].T + params["fc2_b"]


if __name__ == "__main__":
    key = jax.random.PRNGKey(0)
    k_jet, k_pf, k_par = jax.random.split(key, 3)

    num_particles, embedding_dim = 16, 8
    jet_input_dim, hidden_dim, output_dim = 6, 32, 2
    batch = 8

    jet = jax.random.normal(k_jet, (batch, jet_input_dim), jnp.float32)
    pf = jax.random.normal(k_pf, (batch, num_particles, 3), jnp.float32)
    params = init_params(k_par, num_particles, embedding_dim, jet_input_dim,
                         hidden_dim, output_dim)

    out = quark_gluon_forward(jet, pf, params)
    out = jax.block_until_ready(out)

    ref = _reference_forward(jet, pf, params)
    assert out.shape == (batch, output_dim)
    assert jnp.allclose(out, ref, atol=1e-4, rtol=1e-4), \
        float(jnp.max(jnp.abs(out - ref)))

    print("KERNEL_OK")
</pallas_src>

<mosaic_0001>
module attributes {stable_mosaic.version = 11 : i64} {
  func.func @_qg_kernel(%arg0: i32, %arg1: memref<8x6xf32, #tpu.memory_space<vmem>>, %arg2: memref<8x48xf32, #tpu.memory_space<vmem>>, %arg3: memref<6x32xf32, #tpu.memory_space<vmem>>, %arg4: memref<48x32xf32, #tpu.memory_space<vmem>>, %arg5: memref<1x32xf32, #tpu.memory_space<vmem>>, %arg6: memref<32x2xf32, #tpu.memory_space<vmem>>, %arg7: memref<1x2xf32, #tpu.memory_space<vmem>>, %arg8: memref<8x2xf32, #tpu.memory_space<vmem>>) attributes {dimension_semantics = [#tpu.dimension_semantics<parallel>], iteration_bounds = array<i64: 1>, scalar_prefetch = 0 : i64, scratch_operands = 0 : i64, tpu.core_type = #tpu.core_type<tc>, window_params = [{transform_indices = @transform_0, window_bounds = array<i64: 8, 6>}, {transform_indices = @transform_1, window_bounds = array<i64: 8, 48>}, {pipeline_mode = #tpu.pipeline_mode<synchronous>, transform_indices = @transform_2, window_bounds = array<i64: 6, 32>}, {pipeline_mode = #tpu.pipeline_mode<synchronous>, transform_indices = @transform_3, window_bounds = array<i64: 48, 32>}, {pipeline_mode = #tpu.pipeline_mode<synchronous>, transform_indices = @transform_4, window_bounds = array<i64: 1, 32>}, {pipeline_mode = #tpu.pipeline_mode<synchronous>, transform_indices = @transform_5, window_bounds = array<i64: 32, 2>}, {pipeline_mode = #tpu.pipeline_mode<synchronous>, transform_indices = @transform_6, window_bounds = array<i64: 1, 2>}, {transform_indices = @transform_7, window_bounds = array<i64: 8, 2>}]} {
    %c0 = arith.constant 0 : index
    %c0_0 = arith.constant 0 : index
    %0 = vector.load %arg1[%c0, %c0_0] : memref<8x6xf32, #tpu.memory_space<vmem>>, vector<8x6xf32>
    %c0_1 = arith.constant 0 : index
    %c0_2 = arith.constant 0 : index
    %1 = vector.load %arg3[%c0_1, %c0_2] : memref<6x32xf32, #tpu.memory_space<vmem>>, vector<6x32xf32>
    %cst = arith.constant dense<0.000000e+00> : vector<8x32xf32>
    %2 = tpu.matmul %0, %1, %cst {dimension_numbers = #tpu.dot_dimension_numbers<[1], [0], [0], [1], [0, 0, 1, 1], [], []>} : vector<8x6xf32>, vector<6x32xf32>, vector<8x32xf32> -> vector<8x32xf32>
    %c0_3 = arith.constant 0 : index
    %c0_4 = arith.constant 0 : index
    %3 = vector.load %arg2[%c0_3, %c0_4] : memref<8x48xf32, #tpu.memory_space<vmem>>, vector<8x48xf32>
    %c0_5 = arith.constant 0 : index
    %c0_6 = arith.constant 0 : index
    %4 = vector.load %arg4[%c0_5, %c0_6] : memref<48x32xf32, #tpu.memory_space<vmem>>, vector<48x32xf32>
    %cst_7 = arith.constant dense<0.000000e+00> : vector<8x32xf32>
    %5 = tpu.matmul %3, %4, %cst_7 {dimension_numbers = #tpu.dot_dimension_numbers<[1], [0], [0], [1], [0, 0, 1, 1], [], []>} : vector<8x48xf32>, vector<48x32xf32>, vector<8x32xf32> -> vector<8x32xf32>
    %6 = arith.addf %2, %5 : vector<8x32xf32>
    %c0_8 = arith.constant 0 : index
    %c0_9 = arith.constant 0 : index
    %7 = vector.load %arg5[%c0_8, %c0_9] : memref<1x32xf32, #tpu.memory_space<vmem>>, vector<1x32xf32>
    %8 = vector.broadcast %7 : vector<1x32xf32> to vector<8x32xf32>
    %9 = arith.addf %6, %8 : vector<8x32xf32>
    %cst_10 = arith.constant 0.000000e+00 : f32
    %10 = vector.broadcast %cst_10 : f32 to vector<8x32xf32>
    %11 = arith.maximumf %9, %10 : vector<8x32xf32>
    %c0_11 = arith.constant 0 : index
    %c0_12 = arith.constant 0 : index
    %12 = vector.load %arg6[%c0_11, %c0_12] : memref<32x2xf32, #tpu.memory_space<vmem>>, vector<32x2xf32>
    %cst_13 = arith.constant dense<0.000000e+00> : vector<8x2xf32>
    %13 = tpu.matmul %11, %12, %cst_13 {dimension_numbers = #tpu.dot_dimension_numbers<[1], [0], [0], [1], [0, 0, 1, 1], [], []>} : vector<8x32xf32>, vector<32x2xf32>, vector<8x2xf32> -> vector<8x2xf32>
    %c0_14 = arith.constant 0 : index
    %c0_15 = arith.constant 0 : index
    %14 = vector.load %arg7[%c0_14, %c0_15] : memref<1x2xf32, #tpu.memory_space<vmem>>, vector<1x2xf32>
    %15 = vector.broadcast %14 : vector<1x2xf32> to vector<8x2xf32>
    %16 = arith.addf %13, %15 : vector<8x2xf32>
    %c0_16 = arith.constant 0 : index
    %c0_17 = arith.constant 0 : index
    %17 = vector.load %arg8[%c0_16, %c0_17] : memref<8x2xf32, #tpu.memory_space<vmem>>, vector<8x2xf32>
    tpu.vector_store %arg8[%c0_16, %c0_17], %16 {strides = array<i32>} : memref<8x2xf32, #tpu.memory_space<vmem>>, vector<8x2xf32>,
    return
  }
  func.func @transform_0(%arg0: i32) -> (i32, i32) {
    %c0_i32 = arith.constant 0 : i32
    %c0_i32_0 = arith.constant 0 : i32
    return %arg0, %c0_i32 : i32, i32
  }
  func.func @transform_1(%arg0: i32) -> (i32, i32) {
    %c0_i32 = arith.constant 0 : i32
    %c0_i32_0 = arith.constant 0 : i32
    return %arg0, %c0_i32 : i32, i32
  }
  func.func @transform_2(%arg0: i32) -> (i32, i32) {
    %c0_i32 = arith.constant 0 : i32
    %c0_i32_0 = arith.constant 0 : i32
    %c0_i32_1 = arith.constant 0 : i32
    return %c0_i32, %c0_i32_0 : i32, i32
  }
  func.func @transform_3(%arg0: i32) -> (i32, i32) {
    %c0_i32 = arith.constant 0 : i32
    %c0_i32_0 = arith.constant 0 : i32
    %c0_i32_1 = arith.constant 0 : i32
    return %c0_i32, %c0_i32_0 : i32, i32
  }
  func.func @transform_4(%arg0: i32) -> (i32, i32) {
    %c0_i32 = arith.constant 0 : i32
    %c0_i32_0 = arith.constant 0 : i32
    %c0_i32_1 = arith.constant 0 : i32
    return %c0_i32, %c0_i32_0 : i32, i32
  }
  func.func @transform_5(%arg0: i32) -> (i32, i32) {
    %c0_i32 = arith.constant 0 : i32
    %c0_i32_0 = arith.constant 0 : i32
    %c0_i32_1 = arith.constant 0 : i32
    return %c0_i32, %c0_i32_0 : i32, i32
  }
  func.func @transform_6(%arg0: i32) -> (i32, i32) {
    %c0_i32 = arith.constant 0 : i32
    %c0_i32_0 = arith.constant 0 : i32
    %c0_i32_1 = arith.constant 0 : i32
    return %c0_i32, %c0_i32_0 : i32, i32
  }
  func.func @transform_7(%arg0: i32) -> (i32, i32) {
    %c0_i32 = arith.constant 0 : i32
    %c0_i32_0 = arith.constant 0 : i32
    return %arg0, %c0_i32 : i32, i32
  }
}

</mosaic_0001>

<bundles_post_ra>
// kernel: tpu_custom_call.1
= control target key start
LH: loop header
LB: loop body
LE: loop exit
PB: predicated region body
PF: predicated region fallthrough
CT: control target
= control target key end

     0   :  { %v356_v0 = vmov 0.0|0.0   ;;  %v357_v4 = vmov 0.0   ;;  %vm113_vm0 = vcmask 1045504   ;;  %vm358_vm1 = vmmov 0   ;;  %s447_s3 = inlined_call_operand.vmem [shape: f32[48,32], index: 3, kind: input, shape index: {}]   ;;  %s448_s2 = inlined_call_operand.vmem [shape: f32[6,32], index: 2, kind: input, shape index: {}]   ;;  %s449_s0 = inlined_call_operand.vmem [shape: f32[8,6], index: 0, kind: input, shape index: {}]   ;;  %s450_s1 = inlined_call_operand.vmem [shape: f32[8,48], index: 1, kind: input, shape index: {}]   ;;  %s451_s5 = inlined_call_operand.vmem [shape: f32[32,2], index: 5, kind: input, shape index: {}]   ;;  %s452_s4 = inlined_call_operand.vmem [shape: f32[1,32], index: 4, kind: input, shape index: {}]   ;;  %s453_s6 = inlined_call_operand.vmem [shape: f32[1,2], index: 6, kind: input, shape index: {}]   ;;  %s454_s7 = inlined_call_operand.vmem [shape: f32[8,2], index: 7, kind: output, shape index: {}]  }
   0x1   :  { %338 = vmatprep.subr.bf16.mxu0 %v356_v0  ;;  %v29_v1 = vld [vmem:[%s447_s3] sm:$0xff]  ;;  %v30_v2 = vld [vmem:[%s447_s3 + $0x8] sm:$0xff]  ;;  %v31_v3 = vld [vmem:[%s447_s3 + $0x10] sm:$0xff]  ;;  %322 = vmatprep.subr.mxu1 %v357_v4  ;;  %vm109_vm2 = vcmask 48128   ;;  %vm35_vm3 = vcmask 392192   ;;  %vm207_vm4 = vcmask 261120  }
   0x2   :  { %v339_v5 = vpack.c.bf16 %v30_v2, %v29_v1  ;;  %v32_v6 = vld [vmem:[%s447_s3 + $0x18] sm:$0xff]  ;;  %324 = vmatprep.mubr.msk.f32.mxu1 %vm358_vm1, %v357_v4  ;;  %319 = vmatprep.mubr.msk.f32.mxu0 %vm358_vm1, %v357_v4  ;;  %v27_v7 = vld [vmem:[%s448_s2] sm:$0x3f]  ;;  %v34_v11 = vld [vmem:[%s447_s3 + $0x28] sm:$0xff]  ;;  %vm281_vm5 = vcmask 15360  }
   0x3   :  { %v26_v8 = vld [vmem:[%s449_s0] sm:$0xff]  ;;  %v342_v9 = vpack.c.bf16 %v32_v6, %v31_v3  ;;  %323 = vmatpush3.msk.msra.mxu1 %vm113_vm0, %v27_v7  ;;  %v197_v15 = vld [vmem:[%s451_s5 + $0x8] sm:$0xff]  ;;  %v198_v17 = vld [vmem:[%s451_s5 + $0x10] sm:$0xff] }
   0x4   :  { %340 = vmatpush3.bf16.msra.mxu0 %v339_v5  ;;  %v33_v10 = vld [vmem:[%s447_s3 + $0x20] sm:$0xff]  ;;  %325 = vmatmul.mubr.msk.f32.vlgmr.msra.gmra.mrb[0].mxu1 %vm109_vm2, %v26_v8  ;;  %v199_v18 = vld [vmem:[%s451_s5 + $0x18] sm:$0xff] }
   0x5   :  { %341 = vmatprep.subr.bf16.mxu0 %v356_v0  ;;  %347 = vmatprep.subr.bf16.mxu1 %v356_v0  ;;  %v345_v12 = vpack.c.bf16 %v34_v11, %v33_v10  ;;  %v28_v13 = vld [vmem:[%s450_s1] sm:$0xff]  ;;  %v351_v19 = vpack.c.bf16 %v199_v18, %v198_v17 }
   0x6   :  { %335 = vmatprep.mubr.msk.f32.mxu1 %vm358_vm1, %v357_v4  ;;  %v196_v14 = vld [vmem:[%s451_s5] sm:$0xff] }
   0x7   :  { %v348_v16 = vpack.c.bf16 %v197_v15, %v196_v14  ;;  %v290_v23 = vld [vmem:[%s452_s4] ss:$0 sm:$0xff] }
   0x8   :  { %343 = vmatpush3.bf16.msra.mxu0 %v342_v9  ;;  %v291_v28 = vld [vmem:[%s453_s6] ss:$0 sm:$0xff] }
   0x9   :  { %344 = vmatprep.subr.bf16.mxu0 %v356_v0  ;;  %349 = vmatpush3.bf16.msra.mxu1 %v348_v16 }
   0xa   :  { %350 = vmatprep.subr.bf16.mxu1 %v356_v0 }
   0xc   :  { %346 = vmatpush3.bf16.msra.mxu0 %v345_v12 }
   0xd   :  { %352 = vmatpush3.bf16.msra.mxu1 %v351_v19 }
   0xf   :  { %320 = vmatmul.mubr.msk.f32.vlgmr.msra.gmra.mrb[0].mxu0 %vm35_vm3, %v28_v13 }
  0xd7   :  { %v183_v20 = vpop.f32.mrb[0].mxu1 }
  0xd8   :  { %v326_v21 = vpop.f32.mrb[1].mxu1 }
  0xe2   :  { %v105_v22 = vpop.f32.mrb[0].mxu0 }
  0xe3   :  { %v184_v24 = vadd.f32 %v183_v20, %v105_v22  ;;  %v321_v25 = vpop.f32.mrb[1].mxu0 }
  0xe5   :  { %v194_v26 = vadd.f32 %v290_v23, %v184_v24 }
  0xe7   :  { %v195_v27 = vmax.f32 %v194_v26, 0.0 }
  0xe9   :  { %336 = vmatmul.mubr.msk.f32.vlgmr.msra.gmra.mrb[2].mxu1 %vm207_vm4, %v195_v27 }
 0x1bc   :  { %v277_v29 = vpop.f32.mrb[2].mxu1 }
 0x1bd   :  { %v278_v30 = vadd.f32 %v291_v28, %v277_v29  ;;  %v337_v31 = vpop.f32.mrb[3].mxu1 }
 0x1bf   :  { %282 = vst.msk [vmem:[%s454_s7] sm:$0xff] %vm281_vm5, %v278_v30 }

</bundles_post_ra>
